<compile_context>
chip_gen: v6e
topology: v6e:2x2x1
jax: 0.10.0
libtpu: 0.0.40
codegen_flags: <defaults>
</compile_context>

<pallas_src>
import functools

import jax
import jax.numpy as jnp
from jax.experimental import pallas as pl
from jax.experimental.pallas import tpu as pltpu


GAMMA_PAD = 128  # lane-dense width for the (logically (B,1)) gamma output


# ----------------------------------------------------------------------------
# Fused Pallas kernel
# ----------------------------------------------------------------------------
def _fused_forward_kernel(scal_ref, x_ref, w1_ref, b1_ref,
                          w2s_ref, b2s_ref, w2r_ref, b2r_ref,
                          w3s_ref, b3s_ref, w3r_ref, b3r_ref,
                          pnw1_ref, pnw2s_ref, pnw2r_ref,
                          out_ref, gam_ref, *, hidden):
    """Whole CompositeModel forward (eval mode, use_policy=True) per batch tile.

      f1        = relu(x @ [w1_std | w1_rob] + b1)                   (TB, 2H)
      f2{s,r}   = relu(f1{s,r} @ w2{s,r} + b2{s,r})                  (TB, H)
      y_{std,rob} = f2{s,r} @ w3{s,r}' + b3{s,r}'   (logit scale folded)
      g         = <[f1 | f2s | f2r], pn_w'> + pn_b' (BN+affine folded, VPU+XLU)
      alpha     = sigmoid(g) * alpha_scale + alpha_bias
      out       = log((1-alpha)*softmax(y_std) + alpha*softmax(y_rob))
    """
    f32 = jnp.float32
    cd = w1_ref.dtype                    # matmul operand dtype (bf16 or f32)

    # ---- layer 1: merged [STD | ROB] matmul (concat, no zero padding) -------
    x = x_ref[...].astype(cd)
    f1 = jnp.dot(x, w1_ref[...], preferred_element_type=f32) + b1_ref[...]
    f1 = jnp.maximum(f1, 0.0)                                   # (TB, 2H) f32

    # ---- layers 2/3: separate per-branch dots (no zero-padded block-diag) ---
    f1c = f1.astype(cd)
    f1s, f1r = f1c[:, :hidden], f1c[:, hidden:]
    f2s = jnp.maximum(
        jnp.dot(f1s, w2s_ref[...], preferred_element_type=f32) + b2s_ref[...], 0.0)
    f2r = jnp.maximum(
        jnp.dot(f1r, w2r_ref[...], preferred_element_type=f32) + b2r_ref[...], 0.0)
    # std_scale / rob_scale already folded into w3*/b3* at merge time
    y_std = jnp.dot(f2s.astype(cd), w3s_ref[...],
                    preferred_element_type=f32) + b3s_ref[...]
    y_rob = jnp.dot(f2r.astype(cd), w3r_ref[...],
                    preferred_element_type=f32) + b3r_ref[...]

    # ---- mixing-net gamma: VPU multiply + XLU lane-reduce (MXU-free) --------
    # eval BatchNorm1d + gamma affine are folded into pnw*/scal[2]
    g = (jnp.sum(f1 * pnw1_ref[...], axis=-1, keepdims=True)
         + jnp.sum(f2s * pnw2s_ref[...], axis=-1, keepdims=True)
         + jnp.sum(f2r * pnw2r_ref[...], axis=-1, keepdims=True)
         + scal_ref[2])                                          # (TB, 1)
    gam_ref[...] = jnp.broadcast_to(g, gam_ref.shape)  # lane-dense unmasked store

    # scale_alpha (eval): alpha in (alpha_bias, alpha_bias + alpha_scale)
    alpha = jax.nn.sigmoid(g) * scal_ref[0] + scal_ref[1]        # (TB, 1)

    def _softmax(z):
        m = jnp.max(z, axis=-1, keepdims=True)
        e = jnp.exp(z - m)
        d = jnp.sum(e, axis=-1, keepdims=True)
        r = pl.reciprocal(d, approx=True)        # EUP vrcp seed
        r = r * (2.0 - d * r)                    # one Newton step -> f32 accurate
        return e * r

    out_ref[...] = jnp.log((1.0 - alpha) * _softmax(y_std)
                           + alpha * _softmax(y_rob))


def composite_forward(mp, images, *, block_b=None):
    """Mirrors CompositeModel.forward main branch (both base models + mixing
    network, eval mode, use_policy=True, scale_alpha=True, resize=False)."""
    B = images.shape[0]
    x = images.reshape(B, -1).astype(jnp.float32)   # NCHW flatten (resize=False)
    D = x.shape[1]
    hidden = mp["w2s"].shape[0]
    num_classes = mp["w3s"].shape[1]

    if block_b is None:
        block_b = min(B, 128)
    if B % block_b != 0 or block_b % 8 != 0:
        block_b = B                                  # fall back to a single block
    grid = (B // block_b,)

    kernel = functools.partial(_fused_forward_kernel, hidden=hidden)

    row = lambda i, scal: (i, 0)      # batch-tiled arrays follow the grid
    fixed = lambda i, scal: (0, 0)    # weights: same block -> VMEM-resident

    def full(name):
        return pl.BlockSpec(mp[name].shape, fixed)

    flops = 2 * B * (D * 2 * hidden + 2 * hidden * hidden
                     + 2 * hidden * num_classes + 4 * hidden)
    transcendentals = B * (3 * num_classes + 3)
    bytes_accessed = int(x.size * 4
                         + sum(int(v.size) * v.dtype.itemsize for v in mp.values())
                         + B * num_classes * 4 + B * GAMMA_PAD * 4)

    out, g_slab = pl.pallas_call(
        kernel,
        out_shape=(jax.ShapeDtypeStruct((B, num_classes), jnp.float32),
                   jax.ShapeDtypeStruct((B, GAMMA_PAD), jnp.float32)),
        grid_spec=pltpu.PrefetchScalarGridSpec(
            num_scalar_prefetch=1,                      # scalars -> SMEM
            grid=grid,
            in_specs=[pl.BlockSpec((block_b, D), row),  # x (batch-tiled)
                      full("w1"), full("b1"),
                      full("w2s"), full("b2s"), full("w2r"), full("b2r"),
                      full("w3s"), full("b3s"), full("w3r"), full("b3r"),
                      full("pnw1"), full("pnw2s"), full("pnw2r")],
            out_specs=(pl.BlockSpec((block_b, num_classes), row),
                       pl.BlockSpec((block_b, GAMMA_PAD), row)),
        ),
        compiler_params=pltpu.CompilerParams(
            dimension_semantics=("parallel",)),        # megacore on v7x
        cost_estimate=pl.CostEstimate(flops=flops,
                                      transcendentals=transcendentals,
                                      bytes_accessed=bytes_accessed),
    )(mp["scalars"], x, mp["w1"], mp["b1"],
      mp["w2s"], mp["b2s"], mp["w2r"], mp["b2r"],
      mp["w3s"], mp["b3s"], mp["w3r"], mp["b3r"],
      mp["pnw1"], mp["pnw2s"], mp["pnw2r"])

    gammas = g_slab[:, 0]   # column 0 of the lane-dense slab is the real gamma
    return out, gammas


# ----------------------------------------------------------------------------
# Parameters: raw per-branch params + one-time merge into fused-kernel layout
# ----------------------------------------------------------------------------
def init_params(key, in_dim, hidden, num_classes):
    ks = jax.random.split(key, 16)
    s = lambda k, shape, fan_in: (jax.random.normal(k, shape, jnp.float32)
                                  / jnp.sqrt(jnp.float32(fan_in)))
    p = {}
    for prefix, off in (("std", 0), ("rob", 6)):
        p[f"{prefix}_w1"] = s(ks[off + 0], (in_dim, hidden), in_dim)
        p[f"{prefix}_b1"] = s(ks[off + 1], (hidden,), hidden)
        p[f"{prefix}_w2"] = s(ks[off + 2], (hidden, hidden), hidden)
        p[f"{prefix}_b2"] = s(ks[off + 3], (hidden,), hidden)
        p[f"{prefix}_w3"] = s(ks[off + 4], (hidden, num_classes), hidden)
        p[f"{prefix}_b3"] = s(ks[off + 5], (num_classes,), num_classes)
    # stand-in mixing net: concat(f1_std, f1_rob, f2_std, f2_rob) -> 1
    p["pn_w"] = s(ks[12], (4 * hidden, 1), 4 * hidden)
    p["pn_b"] = s(ks[13], (1,), 1)
    # CompositeModel buffers (BatchNorm1d eval stats + fixed scalar parameters)
    p["scalars"] = jnp.array(
        [0.2,    # bn.running_mean
         1.5,    # bn.running_var
         1e-5,   # bn.eps
         0.8,    # gamma_scale
         0.1,    # gamma_bias
         0.5,    # alpha_scale
         0.25,   # alpha_bias   (alpha in (0.25, 0.75) at eval)
         1.0,    # std_scale
         1.2],   # rob_scale
        dtype=jnp.float32)
    return p


def merge_params(p, compute_dtype=jnp.bfloat16):
    """One-time host repack into the fused-kernel layout.

    * layer-1 STD|ROB weights concatenated along outputs (no zeros);
    * layers 2/3 kept as separate per-branch blocks (no block-diag padding);
    * std_scale / rob_scale folded into layer-3 weights + biases;
    * eval BatchNorm1d + gamma affine folded into the mixing-net weights/bias;
    * matmul operands stored in `compute_dtype` (bf16 by default); biases and
      the VPU-path mixing weights stay f32.
    """
    f32, cd = jnp.float32, compute_dtype
    hidden = p["std_w2"].shape[0]
    sc = p["scalars"]
    running_mean, running_var, eps = sc[0], sc[1], sc[2]
    gamma_scale, gamma_bias = sc[3], sc[4]
    alpha_scale, alpha_bias = sc[5], sc[6]
    std_scale, rob_scale = sc[7], sc[8]

    w1 = jnp.concatenate([p["std_w1"], p["rob_w1"]], axis=1).astype(cd)   # (D, 2H)
    b1 = jnp.concatenate([p["std_b1"], p["rob_b1"]]).reshape(1, -1).astype(f32)

    w2s = p["std_w2"].astype(cd)
    w2r = p["rob_w2"].astype(cd)
    b2s = p["std_b2"].reshape(1, -1).astype(f32)
    b2r = p["rob_b2"].reshape(1, -1).astype(f32)

    # fold the fixed logit scales into layer 3 (free: host-side, one time)
    w3s = (p["std_w3"] * std_scale).astype(cd)
    w3r = (p["rob_w3"] * rob_scale).astype(cd)
    b3s = (p["std_b3"] * std_scale).reshape(1, -1).astype(f32)
    b3r = (p["rob_b3"] * rob_scale).reshape(1, -1).astype(f32)

    # fold eval BN + gamma affine into the mixing-net weights / bias
    bn_scale = gamma_scale / jnp.sqrt(running_var + eps)
    pnw = p["pn_w"][:, 0] * bn_scale                                     # (4H,)
    pnb = (p["pn_b"][0] - running_mean) * bn_scale + gamma_bias
    pnw1 = pnw[: 2 * hidden].reshape(1, -1).astype(f32)                  # f1 = [f1s|f1r]
    pnw2s = pnw[2 * hidden: 3 * hidden].reshape(1, -1).astype(f32)       # f2s
    pnw2r = pnw[3 * hidden:].reshape(1, -1).astype(f32)                  # f2r

    scalars = jnp.stack([alpha_scale, alpha_bias, pnb]).astype(f32)      # SMEM (3,)

    return dict(scalars=scalars, w1=w1, b1=b1, w2s=w2s, b2s=b2s, w2r=w2r,
                b2r=b2r, w3s=w3s, b3s=b3s, w3r=w3r, b3r=b3r,
                pnw1=pnw1, pnw2s=pnw2s, pnw2r=pnw2r)


# ----------------------------------------------------------------------------
# Pure-jnp reference (mirrors the original module math on the raw params)
# ----------------------------------------------------------------------------
def reference_forward(params, images):
    B = images.shape[0]
    x = images.reshape(B, -1)

    def mlp(prefix):
        f1 = jnp.maximum(x @ params[f"{prefix}_w1"] + params[f"{prefix}_b1"], 0.0)
        f2 = jnp.maximum(f1 @ params[f"{prefix}_w2"] + params[f"{prefix}_b2"], 0.0)
        return f1, f2, f2 @ params[f"{prefix}_w3"] + params[f"{prefix}_b3"]

    f1s, f2s, out_std = mlp("std")
    f1r, f2r, out_rob = mlp("rob")
    feats = jnp.concatenate([f1s, f1r, f2s, f2r], axis=-1)
    g = feats @ params["pn_w"] + params["pn_b"]
    sc = params["scalars"]
    g = (g - sc[0]) / jnp.sqrt(sc[1] + sc[2]) * sc[3] + sc[4]
    a = jax.nn.sigmoid(g) * sc[5] + sc[6]
    out = jnp.log((1 - a) * jax.nn.softmax(out_std * sc[7], axis=1)
                  + a * jax.nn.softmax(out_rob * sc[8], axis=1))
    return out, g.reshape(-1)


if __name__ == "__main__":
    B, C, H, W = 32, 3, 16, 16      # small NCHW images; batch tiled 16 -> 2 steps
    HIDDEN, NUM_CLASSES = 32, 128
    BLOCK_B = 16

    key = jax.random.PRNGKey(0)
    k_img, k_par = jax.random.split(key)
    images = jax.random.normal(k_img, (B, C, H, W), jnp.float32)
    params = init_params(k_par, C * H * W, HIDDEN, NUM_CLASSES)
    ref_out, ref_g = reference_forward(params, images)

    run = jax.jit(functools.partial(composite_forward, block_b=BLOCK_B))

    # ---- strict check: f32 matmul operands ---------------------------------
    merged_f32 = merge_params(params, compute_dtype=jnp.float32)
    out32, g32 = run(merged_f32, images)
    jax.block_until_ready((out32, g32))
    assert out32.shape == (B, NUM_CLASSES) and g32.shape == (B,)
    assert jnp.allclose(out32, ref_out, atol=1e-4, rtol=1e-4)
    assert jnp.allclose(g32, ref_g, atol=1e-4, rtol=1e-4)

    # ---- fast path: bf16 matmul operands, f32 accumulation (looser tol) ----
    merged_bf16 = merge_params(params, compute_dtype=jnp.bfloat16)
    out16, g16 = run(merged_bf16, images)
    jax.block_until_ready((out16, g16))
    assert jnp.allclose(out16, ref_out, atol=1e-1, rtol=5e-2)
    assert jnp.allclose(g16, ref_g, atol=1e-1, rtol=5e-2)

    print("KERNEL_OK")
</pallas_src>

<mosaic_0001>
module attributes {stable_mosaic.version = 11 : i64} {
  func.func @_fused_forward_kernel(%arg0: i32, %arg1: memref<3xf32, #tpu.memory_space<smem>>, %arg2: memref<16x768xf32, #tpu.memory_space<vmem>>, %arg3: memref<768x64xf32, #tpu.memory_space<vmem>>, %arg4: memref<1x64xf32, #tpu.memory_space<vmem>>, %arg5: memref<32x32xf32, #tpu.memory_space<vmem>>, %arg6: memref<1x32xf32, #tpu.memory_space<vmem>>, %arg7: memref<32x32xf32, #tpu.memory_space<vmem>>, %arg8: memref<1x32xf32, #tpu.memory_space<vmem>>, %arg9: memref<32x128xf32, #tpu.memory_space<vmem>>, %arg10: memref<1x128xf32, #tpu.memory_space<vmem>>, %arg11: memref<32x128xf32, #tpu.memory_space<vmem>>, %arg12: memref<1x128xf32, #tpu.memory_space<vmem>>, %arg13: memref<1x64xf32, #tpu.memory_space<vmem>>, %arg14: memref<1x32xf32, #tpu.memory_space<vmem>>, %arg15: memref<1x32xf32, #tpu.memory_space<vmem>>, %arg16: memref<16x128xf32, #tpu.memory_space<vmem>>, %arg17: memref<16x128xf32, #tpu.memory_space<vmem>>) attributes {dimension_semantics = [#tpu.dimension_semantics<parallel>], iteration_bounds = array<i64: 2>, scalar_prefetch = 1 : i64, scratch_operands = 0 : i64, tpu.core_type = #tpu.core_type<tc>, window_params = [{transform_indices = @transform_0, window_bounds = array<i64: 16, 768>}, {pipeline_mode = #tpu.pipeline_mode<synchronous>, transform_indices = @transform_1, window_bounds = array<i64: 768, 64>}, {pipeline_mode = #tpu.pipeline_mode<synchronous>, transform_indices = @transform_2, window_bounds = array<i64: 1, 64>}, {pipeline_mode = #tpu.pipeline_mode<synchronous>, transform_indices = @transform_3, window_bounds = array<i64: 32, 32>}, {pipeline_mode = #tpu.pipeline_mode<synchronous>, transform_indices = @transform_4, window_bounds = array<i64: 1, 32>}, {pipeline_mode = #tpu.pipeline_mode<synchronous>, transform_indices = @transform_5, window_bounds = array<i64: 32, 32>}, {pipeline_mode = #tpu.pipeline_mode<synchronous>, transform_indices = @transform_6, window_bounds = array<i64: 1, 32>}, {pipeline_mode = #tpu.pipeline_mode<synchronous>, transform_indices = @transform_7, window_bounds = array<i64: 32, 128>}, {pipeline_mode = #tpu.pipeline_mode<synchronous>, transform_indices = @transform_8, window_bounds = array<i64: 1, 128>}, {pipeline_mode = #tpu.pipeline_mode<synchronous>, transform_indices = @transform_9, window_bounds = array<i64: 32, 128>}, {pipeline_mode = #tpu.pipeline_mode<synchronous>, transform_indices = @transform_10, window_bounds = array<i64: 1, 128>}, {pipeline_mode = #tpu.pipeline_mode<synchronous>, transform_indices = @transform_11, window_bounds = array<i64: 1, 64>}, {pipeline_mode = #tpu.pipeline_mode<synchronous>, transform_indices = @transform_12, window_bounds = array<i64: 1, 32>}, {pipeline_mode = #tpu.pipeline_mode<synchronous>, transform_indices = @transform_13, window_bounds = array<i64: 1, 32>}, {transform_indices = @transform_14, window_bounds = array<i64: 16, 128>}, {transform_indices = @transform_15, window_bounds = array<i64: 16, 128>}]} {
    %c0 = arith.constant 0 : index
    %c0_0 = arith.constant 0 : index
    %0 = vector.load %arg2[%c0, %c0_0] : memref<16x768xf32, #tpu.memory_space<vmem>>, vector<16x768xf32>
    %c0_1 = arith.constant 0 : index
    %c0_2 = arith.constant 0 : index
    %1 = vector.load %arg3[%c0_1, %c0_2] : memref<768x64xf32, #tpu.memory_space<vmem>>, vector<768x64xf32>
    %cst = arith.constant dense<0.000000e+00> : vector<16x64xf32>
    %2 = tpu.matmul %0, %1, %cst {dimension_numbers = #tpu.dot_dimension_numbers<[1], [0], [0], [1], [0, 0, 1, 1], [], []>} : vector<16x768xf32>, vector<768x64xf32>, vector<16x64xf32> -> vector<16x64xf32>
    %c0_3 = arith.constant 0 : index
    %c0_4 = arith.constant 0 : index
    %3 = vector.load %arg4[%c0_3, %c0_4] : memref<1x64xf32, #tpu.memory_space<vmem>>, vector<1x64xf32>
    %4 = vector.broadcast %3 : vector<1x64xf32> to vector<16x64xf32>
    %5 = arith.addf %2, %4 : vector<16x64xf32>
    %cst_5 = arith.constant 0.000000e+00 : f32
    %6 = vector.broadcast %cst_5 : f32 to vector<16x64xf32>
    %7 = arith.maximumf %5, %6 : vector<16x64xf32>
    %8 = vector.extract_strided_slice %7 {offsets = [0, 0], sizes = [16, 32], strides = [1, 1]} : vector<16x64xf32> to vector<16x32xf32>
    %9 = vector.extract_strided_slice %7 {offsets = [0, 32], sizes = [16, 32], strides = [1, 1]} : vector<16x64xf32> to vector<16x32xf32>
    %c0_6 = arith.constant 0 : index
    %c0_7 = arith.constant 0 : index
    %10 = vector.load %arg5[%c0_6, %c0_7] : memref<32x32xf32, #tpu.memory_space<vmem>>, vector<32x32xf32>
    %cst_8 = arith.constant dense<0.000000e+00> : vector<16x32xf32>
    %11 = tpu.matmul %8, %10, %cst_8 {dimension_numbers = #tpu.dot_dimension_numbers<[1], [0], [0], [1], [0, 0, 1, 1], [], []>} : vector<16x32xf32>, vector<32x32xf32>, vector<16x32xf32> -> vector<16x32xf32>
    %c0_9 = arith.constant 0 : index
    %c0_10 = arith.constant 0 : index
    %12 = vector.load %arg6[%c0_9, %c0_10] : memref<1x32xf32, #tpu.memory_space<vmem>>, vector<1x32xf32>
    %13 = vector.broadcast %12 : vector<1x32xf32> to vector<16x32xf32>
    %14 = arith.addf %11, %13 : vector<16x32xf32>
    %cst_11 = arith.constant 0.000000e+00 : f32
    %15 = vector.broadcast %cst_11 : f32 to vector<16x32xf32>
    %16 = arith.maximumf %14, %15 : vector<16x32xf32>
    %c0_12 = arith.constant 0 : index
    %c0_13 = arith.constant 0 : index
    %17 = vector.load %arg7[%c0_12, %c0_13] : memref<32x32xf32, #tpu.memory_space<vmem>>, vector<32x32xf32>
    %cst_14 = arith.constant dense<0.000000e+00> : vector<16x32xf32>
    %18 = tpu.matmul %9, %17, %cst_14 {dimension_numbers = #tpu.dot_dimension_numbers<[1], [0], [0], [1], [0, 0, 1, 1], [], []>} : vector<16x32xf32>, vector<32x32xf32>, vector<16x32xf32> -> vector<16x32xf32>
    %c0_15 = arith.constant 0 : index
    %c0_16 = arith.constant 0 : index
    %19 = vector.load %arg8[%c0_15, %c0_16] : memref<1x32xf32, #tpu.memory_space<vmem>>, vector<1x32xf32>
    %20 = vector.broadcast %19 : vector<1x32xf32> to vector<16x32xf32>
    %21 = arith.addf %18, %20 : vector<16x32xf32>
    %cst_17 = arith.constant 0.000000e+00 : f32
    %22 = vector.broadcast %cst_17 : f32 to vector<16x32xf32>
    %23 = arith.maximumf %21, %22 : vector<16x32xf32>
    %c0_18 = arith.constant 0 : index
    %c0_19 = arith.constant 0 : index
    %24 = vector.load %arg9[%c0_18, %c0_19] : memref<32x128xf32, #tpu.memory_space<vmem>>, vector<32x128xf32>
    %cst_20 = arith.constant dense<0.000000e+00> : vector<16x128xf32>
    %25 = tpu.matmul %16, %24, %cst_20 {dimension_numbers = #tpu.dot_dimension_numbers<[1], [0], [0], [1], [0, 0, 1, 1], [], []>} : vector<16x32xf32>, vector<32x128xf32>, vector<16x128xf32> -> vector<16x128xf32>
    %c0_21 = arith.constant 0 : index
    %c0_22 = arith.constant 0 : index
    %26 = vector.load %arg10[%c0_21, %c0_22] : memref<1x128xf32, #tpu.memory_space<vmem>>, vector<1x128xf32>
    %27 = vector.broadcast %26 : vector<1x128xf32> to vector<16x128xf32>
    %28 = arith.addf %25, %27 : vector<16x128xf32>
    %c0_23 = arith.constant 0 : index
    %c0_24 = arith.constant 0 : index
    %29 = vector.load %arg11[%c0_23, %c0_24] : memref<32x128xf32, #tpu.memory_space<vmem>>, vector<32x128xf32>
    %cst_25 = arith.constant dense<0.000000e+00> : vector<16x128xf32>
    %30 = tpu.matmul %23, %29, %cst_25 {dimension_numbers = #tpu.dot_dimension_numbers<[1], [0], [0], [1], [0, 0, 1, 1], [], []>} : vector<16x32xf32>, vector<32x128xf32>, vector<16x128xf32> -> vector<16x128xf32>
    %c0_26 = arith.constant 0 : index
    %c0_27 = arith.constant 0 : index
    %31 = vector.load %arg12[%c0_26, %c0_27] : memref<1x128xf32, #tpu.memory_space<vmem>>, vector<1x128xf32>
    %32 = vector.broadcast %31 : vector<1x128xf32> to vector<16x128xf32>
    %33 = arith.addf %30, %32 : vector<16x128xf32>
    %c0_28 = arith.constant 0 : index
    %c0_29 = arith.constant 0 : index
    %34 = vector.load %arg13[%c0_28, %c0_29] : memref<1x64xf32, #tpu.memory_space<vmem>>, vector<1x64xf32>
    %35 = vector.broadcast %34 : vector<1x64xf32> to vector<16x64xf32>
    %36 = arith.mulf %7, %35 : vector<16x64xf32>
    %cst_30 = arith.constant dense<0.000000e+00> : vector<16xf32>
    %37 = vector.multi_reduction <add>, %36, %cst_30 [1] : vector<16x64xf32> to vector<16xf32>
    %38 = vector.shape_cast %37 : vector<16xf32> to vector<16x1xf32>
    %c0_31 = arith.constant 0 : index
    %c0_32 = arith.constant 0 : index
    %39 = vector.load %arg14[%c0_31, %c0_32] : memref<1x32xf32, #tpu.memory_space<vmem>>, vector<1x32xf32>
    %40 = vector.broadcast %39 : vector<1x32xf32> to vector<16x32xf32>
    %41 = arith.mulf %16, %40 : vector<16x32xf32>
    %cst_33 = arith.constant dense<0.000000e+00> : vector<16xf32>
    %42 = vector.multi_reduction <add>, %41, %cst_33 [1] : vector<16x32xf32> to vector<16xf32>
    %43 = vector.shape_cast %42 : vector<16xf32> to vector<16x1xf32>
    %44 = arith.addf %38, %43 : vector<16x1xf32>
    %c0_34 = arith.constant 0 : index
    %c0_35 = arith.constant 0 : index
    %45 = vector.load %arg15[%c0_34, %c0_35] : memref<1x32xf32, #tpu.memory_space<vmem>>, vector<1x32xf32>
    %46 = vector.broadcast %45 : vector<1x32xf32> to vector<16x32xf32>
    %47 = arith.mulf %23, %46 : vector<16x32xf32>
    %cst_36 = arith.constant dense<0.000000e+00> : vector<16xf32>
    %48 = vector.multi_reduction <add>, %47, %cst_36 [1] : vector<16x32xf32> to vector<16xf32>
    %49 = vector.shape_cast %48 : vector<16xf32> to vector<16x1xf32>
    %50 = arith.addf %44, %49 : vector<16x1xf32>
    %c2 = arith.constant 2 : index
    %51 = memref.load %arg1[%c2] : memref<3xf32, #tpu.memory_space<smem>>
    %52 = vector.broadcast %51 : f32 to vector<16x1xf32>
    %53 = arith.addf %50, %52 : vector<16x1xf32>
    %54 = vector.shape_cast %53 : vector<16x1xf32> to vector<16x1xf32>
    %55 = vector.broadcast %54 : vector<16x1xf32> to vector<16x128xf32>
    %c0_37 = arith.constant 0 : index
    %c0_38 = arith.constant 0 : index
    %56 = vector.load %arg17[%c0_37, %c0_38] : memref<16x128xf32, #tpu.memory_space<vmem>>, vector<16x128xf32>
    tpu.vector_store %arg17[%c0_37, %c0_38], %55 {strides = array<i32>} : memref<16x128xf32, #tpu.memory_space<vmem>>, vector<16x128xf32>,
    %57 = arith.negf %53 : vector<16x1xf32>
    %58 = math.exp %57 : vector<16x1xf32>
    %cst_39 = arith.constant 1.000000e+00 : f32
    %59 = vector.broadcast %cst_39 : f32 to vector<16x1xf32>
    %60 = arith.addf %59, %58 : vector<16x1xf32>
    %61 = arith.divf %59, %60 : vector<16x1xf32>
    %c0_40 = arith.constant 0 : index
    %62 = memref.load %arg1[%c0_40] : memref<3xf32, #tpu.memory_space<smem>>
    %63 = vector.broadcast %62 : f32 to vector<16x1xf32>
    %64 = arith.mulf %61, %63 : vector<16x1xf32>
    %c1 = arith.constant 1 : index
    %65 = memref.load %arg1[%c1] : memref<3xf32, #tpu.memory_space<smem>>
    %66 = vector.broadcast %65 : f32 to vector<16x1xf32>
    %67 = arith.addf %64, %66 : vector<16x1xf32>
    %cst_41 = arith.constant 1.000000e+00 : f32
    %68 = vector.broadcast %cst_41 : f32 to vector<16x1xf32>
    %69 = arith.subf %68, %67 : vector<16x1xf32>
    %cst_42 = arith.constant dense<0xFF800000> : vector<16xf32>
    %70 = vector.multi_reduction <maximumf>, %28, %cst_42 [1] : vector<16x128xf32> to vector<16xf32>
    %71 = vector.shape_cast %70 : vector<16xf32> to vector<16x1xf32>
    %72 = vector.broadcast %71 : vector<16x1xf32> to vector<16x128xf32>
    %73 = arith.subf %28, %72 : vector<16x128xf32>
    %74 = math.exp %73 : vector<16x128xf32>
    %cst_43 = arith.constant dense<0.000000e+00> : vector<16xf32>
    %75 = vector.multi_reduction <add>, %74, %cst_43 [1] : vector<16x128xf32> to vector<16xf32>
    %76 = vector.shape_cast %75 : vector<16xf32> to vector<16x1xf32>
    %77 = tpu.reciprocal %76 {approx = true} : vector<16x1xf32> -> vector<16x1xf32>
    %78 = arith.mulf %76, %77 : vector<16x1xf32>
    %cst_44 = arith.constant 2.000000e+00 : f32
    %79 = vector.broadcast %cst_44 : f32 to vector<16x1xf32>
    %80 = arith.subf %79, %78 : vector<16x1xf32>
    %81 = arith.mulf %77, %80 : vector<16x1xf32>
    %82 = vector.broadcast %81 : vector<16x1xf32> to vector<16x128xf32>
    %83 = arith.mulf %74, %82 : vector<16x128xf32>
    %84 = vector.broadcast %69 : vector<16x1xf32> to vector<16x128xf32>
    %85 = arith.mulf %84, %83 : vector<16x128xf32>
    %cst_45 = arith.constant dense<0xFF800000> : vector<16xf32>
    %86 = vector.multi_reduction <maximumf>, %33, %cst_45 [1] : vector<16x128xf32> to vector<16xf32>
    %87 = vector.shape_cast %86 : vector<16xf32> to vector<16x1xf32>
    %88 = vector.broadcast %87 : vector<16x1xf32> to vector<16x128xf32>
    %89 = arith.subf %33, %88 : vector<16x128xf32>
    %90 = math.exp %89 : vector<16x128xf32>
    %cst_46 = arith.constant dense<0.000000e+00> : vector<16xf32>
    %91 = vector.multi_reduction <add>, %90, %cst_46 [1] : vector<16x128xf32> to vector<16xf32>
    %92 = vector.shape_cast %91 : vector<16xf32> to vector<16x1xf32>
    %93 = tpu.reciprocal %92 {approx = true} : vector<16x1xf32> -> vector<16x1xf32>
    %94 = arith.mulf %92, %93 : vector<16x1xf32>
    %cst_47 = arith.constant 2.000000e+00 : f32
    %95 = vector.broadcast %cst_47 : f32 to vector<16x1xf32>
    %96 = arith.subf %95, %94 : vector<16x1xf32>
    %97 = arith.mulf %93, %96 : vector<16x1xf32>
    %98 = vector.broadcast %97 : vector<16x1xf32> to vector<16x128xf32>
    %99 = arith.mulf %90, %98 : vector<16x128xf32>
    %100 = vector.broadcast %67 : vector<16x1xf32> to vector<16x128xf32>
    %101 = arith.mulf %100, %99 : vector<16x128xf32>
    %102 = arith.addf %85, %101 : vector<16x128xf32>
    %103 = math.log %102 : vector<16x128xf32>
    %c0_48 = arith.constant 0 : index
    %c0_49 = arith.constant 0 : index
    %104 = vector.load %arg16[%c0_48, %c0_49] : memref<16x128xf32, #tpu.memory_space<vmem>>, vector<16x128xf32>
    tpu.vector_store %arg16[%c0_48, %c0_49], %103 {strides = array<i32>} : memref<16x128xf32, #tpu.memory_space<vmem>>, vector<16x128xf32>,
    return
  }
  func.func @transform_0(%arg0: i32, %arg1: memref<3xf32, #tpu.memory_space<smem>>) -> (i32, i32) {
    %c0_i32 = arith.constant 0 : i32
    %c0_i32_0 = arith.constant 0 : i32
    return %arg0, %c0_i32 : i32, i32
  }
  func.func @transform_1(%arg0: i32, %arg1: memref<3xf32, #tpu.memory_space<smem>>) -> (i32, i32) {
    %c0_i32 = arith.constant 0 : i32
    %c0_i32_0 = arith.constant 0 : i32
    %c0_i32_1 = arith.constant 0 : i32
    return %c0_i32, %c0_i32_0 : i32, i32
  }
  func.func @transform_2(%arg0: i32, %arg1: memref<3xf32, #tpu.memory_space<smem>>) -> (i32, i32) {
    %c0_i32 = arith.constant 0 : i32
    %c0_i32_0 = arith.constant 0 : i32
    %c0_i32_1 = arith.constant 0 : i32
    return %c0_i32, %c0_i32_0 : i32, i32
  }
  func.func @transform_3(%arg0: i32, %arg1: memref<3xf32, #tpu.memory_space<smem>>) -> (i32, i32) {
    %c0_i32 = arith.constant 0 : i32
    %c0_i32_0 = arith.constant 0 : i32
    %c0_i32_1 = arith.constant 0 : i32
    return %c0_i32, %c0_i32_0 : i32, i32
  }
  func.func @transform_4(%arg0: i32, %arg1: memref<3xf32, #tpu.memory_space<smem>>) -> (i32, i32) {
    %c0_i32 = arith.constant 0 : i32
    %c0_i32_0 = arith.constant 0 : i32
    %c0_i32_1 = arith.constant 0 : i32
    return %c0_i32, %c0_i32_0 : i32, i32
  }
  func.func @transform_5(%arg0: i32, %arg1: memref<3xf32, #tpu.memory_space<smem>>) -> (i32, i32) {
    %c0_i32 = arith.constant 0 : i32
    %c0_i32_0 = arith.constant 0 : i32
    %c0_i32_1 = arith.constant 0 : i32
    return %c0_i32, %c0_i32_0 : i32, i32
  }
  func.func @transform_6(%arg0: i32, %arg1: memref<3xf32, #tpu.memory_space<smem>>) -> (i32, i32) {
    %c0_i32 = arith.constant 0 : i32
    %c0_i32_0 = arith.constant 0 : i32
    %c0_i32_1 = arith.constant 0 : i32
    return %c0_i32, %c0_i32_0 : i32, i32
  }
  func.func @transform_7(%arg0: i32, %arg1: memref<3xf32, #tpu.memory_space<smem>>) -> (i32, i32) {
    %c0_i32 = arith.constant 0 : i32
    %c0_i32_0 = arith.constant 0 : i32
    %c0_i32_1 = arith.constant 0 : i32
    return %c0_i32, %c0_i32_0 : i32, i32
  }
  func.func @transform_8(%arg0: i32, %arg1: memref<3xf32, #tpu.memory_space<smem>>) -> (i32, i32) {
    %c0_i32 = arith.constant 0 : i32
    %c0_i32_0 = arith.constant 0 : i32
    %c0_i32_1 = arith.constant 0 : i32
    return %c0_i32, %c0_i32_0 : i32, i32
  }
  func.func @transform_9(%arg0: i32, %arg1: memref<3xf32, #tpu.memory_space<smem>>) -> (i32, i32) {
    %c0_i32 = arith.constant 0 : i32
    %c0_i32_0 = arith.constant 0 : i32
    %c0_i32_1 = arith.constant 0 : i32
    return %c0_i32, %c0_i32_0 : i32, i32
  }
  func.func @transform_10(%arg0: i32, %arg1: memref<3xf32, #tpu.memory_space<smem>>) -> (i32, i32) {
    %c0_i32 = arith.constant 0 : i32
    %c0_i32_0 = arith.constant 0 : i32
    %c0_i32_1 = arith.constant 0 : i32
    return %c0_i32, %c0_i32_0 : i32, i32
  }
  func.func @transform_11(%arg0: i32, %arg1: memref<3xf32, #tpu.memory_space<smem>>) -> (i32, i32) {
    %c0_i32 = arith.constant 0 : i32
    %c0_i32_0 = arith.constant 0 : i32
    %c0_i32_1 = arith.constant 0 : i32
    return %c0_i32, %c0_i32_0 : i32, i32
  }
  func.func @transform_12(%arg0: i32, %arg1: memref<3xf32, #tpu.memory_space<smem>>) -> (i32, i32) {
    %c0_i32 = arith.constant 0 : i32
    %c0_i32_0 = arith.constant 0 : i32
    %c0_i32_1 = arith.constant 0 : i32
    return %c0_i32, %c0_i32_0 : i32, i32
  }
  func.func @transform_13(%arg0: i32, %arg1: memref<3xf32, #tpu.memory_space<smem>>) -> (i32, i32) {
    %c0_i32 = arith.constant 0 : i32
    %c0_i32_0 = arith.constant 0 : i32
    %c0_i32_1 = arith.constant 0 : i32
    return %c0_i32, %c0_i32_0 : i32, i32
  }
  func.func @transform_14(%arg0: i32, %arg1: memref<3xf32, #tpu.memory_space<smem>>) -> (i32, i32) {
    %c0_i32 = arith.constant 0 : i32
    %c0_i32_0 = arith.constant 0 : i32
    return %arg0, %c0_i32 : i32, i32
  }
  func.func @transform_15(%arg0: i32, %arg1: memref<3xf32, #tpu.memory_space<smem>>) -> (i32, i32) {
    %c0_i32 = arith.constant 0 : i32
    %c0_i32_0 = arith.constant 0 : i32
    return %arg0, %c0_i32 : i32, i32
  }
}

</mosaic_0001>

<bundles_post_ra>
// kernel: composite_forward.1
= control target key start
LH: loop header
LB: loop body
LE: loop exit
PB: predicated region body
PF: predicated region fallthrough
CT: control target
= control target key end

     0   :  { %s2473_s0 = inlined_call_operand.vmem [shape: f32[3], index: 0, kind: input, shape index: {}]   ;;  %s2474_s1 = inlined_call_operand.vmem [shape: f32[32,768], index: 1, kind: input, shape index: {}]   ;;  %s2475_s2 = inlined_call_operand.vmem [shape: f32[768,64], index: 2, kind: input, shape index: {}]   ;;  %s2476_s3 = inlined_call_operand.vmem [shape: f32[1,64], index: 3, kind: input, shape index: {}]   ;;  %s2477_s4 = inlined_call_operand.vmem [shape: f32[32,32], index: 4, kind: input, shape index: {}]   ;;  %s2478_s5 = inlined_call_operand.vmem [shape: f32[1,32], index: 5, kind: input, shape index: {}]   ;;  %s2479_s6 = inlined_call_operand.vmem [shape: f32[32,32], index: 6, kind: input, shape index: {}]   ;;  %s2480_s7 = inlined_call_operand.vmem [shape: f32[1,32], index: 7, kind: input, shape index: {}]   ;;  %s2481_s8 = inlined_call_operand.vmem [shape: f32[32,128], index: 8, kind: input, shape index: {}]   ;;  %s2482_s9 = inlined_call_operand.vmem [shape: f32[1,128], index: 9, kind: input, shape index: {}]   ;;  %s2483_s10 = inlined_call_operand.vmem [shape: f32[32,128], index: 10, kind: input, shape index: {}]   ;;  %s2484_s11 = inlined_call_operand.vmem [shape: f32[1,128], index: 11, kind: input, shape index: {}]   ;;  %s2485_s12 = inlined_call_operand.vmem [shape: f32[1,64], index: 12, kind: input, shape index: {}]   ;;  %s2486_s13 = inlined_call_operand.vmem [shape: f32[1,32], index: 13, kind: input, shape index: {}]   ;;  %s2487_s14 = inlined_call_operand.vmem [shape: f32[1,32], index: 14, kind: input, shape index: {}]   ;;  %s2488_s15 = inlined_call_operand.hbm [shape: f32[32,128], index: 15, kind: output, shape index: {0}]   ;;  %s2489_s16 = inlined_call_operand.vmem [shape: f32[32,128], index: 16, kind: output, shape index: {1}]  }
   0x1   :  { %2497 = sst [smem:[#allocation14_spill]] %s2473_s0 }
   0x2   :  { %2498 = sst [smem:[#allocation15_spill]] %s2482_s9 }
   0x3   :  { %s2499_s23 = sld [smem:[#allocation14_spill]] }
   0x9   :  { %s22_s9 = sshll.u32 %s2499_s23, 4  ;;  %s23_s9 = int_to_ptr.vmem [resolvable:$true] %s22_s9 }
   0xa   :  { %s1774_s24 = scalar_lea.vmem %s23_s9, 16  ;;  %p1779_p1 = scmp.lt.s32.totalorder %s23_s9, %s23_s9 }
   0xb   :  { %p1775_p0 = scmp.ne.s32.totalorder %s23_s9, %s1774_s24  ;;  %p1780_p2 = scmp.lt.s32.totalorder %s1774_s24, %s1774_s24 }
   0xd   :  { %p1781_p3 = por %p1780_p2, %p1779_p1 }
   0xf   :  { %p1782_p4 = pnand %p1781_p3, %p1775_p0 }
  0x11   :  { %1785 = shalt.err (!%p1782_p4)  }
  0x12   :  { %s1850_s25 = smov [#allocation3]  }
  0x13   :  { %25 = dma.vmem_to_smem %s23_s9, 16, %s1850_s25, [#allocation2] }
  0x14   :  { %1828 = dma.done.wait [#allocation2], 16 }
  0x15   :  { %1829 = vsyncadd [#allocation2], 4294967280 }
  0x16   :  { %27 = sfence }
  0x17   :  { %28 = vsyncpa [#allocation5], 0 }
  0x18   :  { %30 = vsyncpa [#allocation5 + $0x1], 0  ;;  %s1943_s26 = smov 0   ;;  %s1945_s27 = smov 0  }
  0x19   :  { %s1947_s28 = smov 0   ;;  %s1949_s29 = smov 0  }
  0x1a LB: > { %2500 = sst [smem:[#allocation8_spill]] %s1836_s26  ;;  %s1964_s9 = sadd.s32 4294967295, %s1848_s29   ;;  %s1848_s29 = sphi %s1949_s29, %s2514_s29   ;;  %s1844_s28 = sphi %s1947_s28, %s2516_s28   ;;  %s1840_s27 = sphi %s1945_s27, %s2518_s27   ;;  %s1836_s26 = sphi %s1943_s26, %s2517_s26  }
  0x1b   : > { %2501 = sst [smem:[#allocation9_spill]] %s1844_s28  ;;  %s1485_s30 = sadd.s32 4294967294, %s1848_s29  }
  0x1c   : > { %2502 = sst [smem:[#allocation10_spill]] %s1848_s29  ;;  %s1968_s0 = sadd.s32 1, %s1848_s29  }
  0x1d   : > { %2503 = sst [smem:[#allocation11_spill]] %s1968_s0  ;;  %s342_s17 = sadd.s32 1, %s1844_s28 }
  0x1e   : > { %s339_s18 = ssub.s32 %s1848_s29, %s1968_s0  ;;  %p352_p5 = scmp.ne.s32.totalorder %s1844_s28, %s1840_s27 }
  0x1f   : > { %p340_p6 = scmp.eq.s32.totalorder %s339_s18, 0  ;;  %p353_p7 = scmp.eq.s32.totalorder %s1964_s9, 1 }
  0x20   : > { %p358_p8 = scmp.ne.s32.totalorder %s1840_s27, %s1836_s26  ;;  %p359_p9 = scmp.eq.s32.totalorder %s1485_s30, 1 }
  0x21   : > { %s1979_s19 = scalar_select %p340_p6, %s1844_s28, %s342_s17  }
  0x22   : > { %p1981_p10 = por %p353_p7, %p352_p5  ;;  %p1985_p11 = por %p359_p9, %p358_p8 }
  0x23   : > { %2504 = sst [smem:[#allocation12_spill]] %s1979_s19  ;;  %p1488_p12 = scmp.ge.s32.totalorder %s1848_s29, 1 }
  0x24   : > { %s2506_s21 = scalar_select %p1985_p11, 1, 0 }
  0x25   : > { %p452_p13 = scmp.lt.s32.totalorder %s1848_s29, 3 }
  0x26   : > { %2507 = sst [smem:[#allocation13_spill]] %s2506_s21 }
  0x27   : > { %p453_p0 = pnand %p1488_p12, %p452_p13 }
  0x28   : > { %s2494_s17 = sshll.u32 (!%p453_p0), %s1964_s9, 1  ;;  %s2509_s19 = sshll.u32 (!%p453_p0), %s1964_s9, 1 }
  0x29   : > { %456 = sbr.rel (%p453_p0) target bundleno = 1180 (0x49c), region = 76  ;;  %p2087_p1 = scmp.lt.s32.totalorder (!%p453_p0), %s2494_s17, 3 }
  0x2a   : > { %s1851_s17 = smov (!%p453_p0), 96   ;;  %s2510_s22 = sld [smem:[#allocation15_spill]] (!%p453_p0) }
  0x2b   : > { %s1510_s28 = sld [smem:[#allocation3 + $0x2]] (!%p453_p0)  ;;  %s496_s23 = sand.u32 (!%p453_p0), 1, %s1840_s27  }
  0x2c   : > { %s1513_s26 = sld [smem:[#allocation3 + $0x1]] (!%p453_p0)  ;;  %s1489_s24 = sshll.u32 (!%p453_p0), %s496_s23, 4 }
  0x2d   : > { %s1519_s25 = sshll.u32 (!%p453_p0), %s1964_s9, 8  ;;  %s498_s30 = scalar_lea.vmem (!%p453_p0), [#allocation4], %s1489_s24 }
  0x2e   : > { %v563_v0 = vld [vmem:[%s2475_s2 + $0xf8] sm:$0xff]  ;;  %v562_v2 = vld [vmem:[%s2475_s2 + $0xf0] sm:$0xff]  ;;  %v561_v6 = vld [vmem:[%s2475_s2 + $0xe8] sm:$0xff]  ;;  %s2520_s19 = smov (!%p2087_p1, %s2509_s19), 3  ;;  %vm873_vm0 = vcmask 261120   ;;  %vm1246_vm1 = vcmask 523264  }
  0x2f   : > { %v547_v1 = vld [vmem:[%s2475_s2 + $0x78] sm:$0xff]  ;;  %1520 = vmatprep.subr.mxu0 %v563_v0  ;;  %v546_v4 = vld [vmem:[%s2475_s2 + $0x70] sm:$0xff]  ;;  %v545_v8 = vld [vmem:[%s2475_s2 + $0x68] sm:$0xff]  ;;  %s1702_s21 = smul.u32 48, %s2520_s19  ;;  %s1493_s0 = sshll.u32 %s2520_s19, 3 }
  0x30   : > { %v595_v3 = vld [vmem:[%s2475_s2 + $0x1f8] sm:$0xff]  ;;  %1521 = vmatpush3.msra.mxu0 %v547_v1  ;;  %v594_v7 = vld [vmem:[%s2475_s2 + $0x1f0] sm:$0xff]  ;;  %v593_v10 = vld [vmem:[%s2475_s2 + $0x1e8] sm:$0xff]  ;;  %s1305_s19 = sld [smem:[#allocation3]]  ;;  %s2433_s18 = scalar_lea.sflag [#allocation5], %s496_s23 }
  0x31   : > { %v579_v5 = vld [vmem:[%s2475_s2 + $0x178] sm:$0xff]  ;;  %1558 = vmatprep.subr.mxu1 %v595_v3  ;;  %1522 = vmatprep.subr.mxu0 %v562_v2  ;;  %v578_v9 = vld [vmem:[%s2475_s2 + $0x170] sm:$0xff]  ;;  %v560_v11 = vld [vmem:[%s2475_s2 + $0xe0] sm:$0xff]  ;;  %s2173_s29 = scalar_lea.vmem %s2474_s1, %s1702_s21 }
  0x32   : > { %1559 = vmatpush3.msra.mxu1 %v579_v5  ;;  %1523 = vmatpush3.msra.mxu0 %v546_v4  ;;  %v577_v12 = vld [vmem:[%s2475_s2 + $0x168] sm:$0xff]  ;;  %v544_v13 = vld [vmem:[%s2475_s2 + $0x60] sm:$0xff]  ;;  %v559_v15 = vld [vmem:[%s2475_s2 + $0xd8] sm:$0xff] }
  0x33   : > { %1560 = vmatprep.subr.mxu1 %v594_v7  ;;  %1524 = vmatprep.subr.mxu0 %v561_v6  ;;  %v592_v14 = vld [vmem:[%s2475_s2 + $0x1e0] sm:$0xff]  ;;  %v543_v17 = vld [vmem:[%s2475_s2 + $0x58] sm:$0xff]  ;;  %v558_v19 = vld [vmem:[%s2475_s2 + $0xd0] sm:$0xff] }
  0x34   : > { %1561 = vmatpush3.msra.mxu1 %v578_v9  ;;  %1525 = vmatpush3.msra.mxu0 %v545_v8  ;;  %v576_v16 = vld [vmem:[%s2475_s2 + $0x160] sm:$0xff]  ;;  %v591_v18 = vld [vmem:[%s2475_s2 + $0x1d8] sm:$0xff]  ;;  %v542_v21 = vld [vmem:[%s2475_s2 + $0x50] sm:$0xff] }
  0x35   : > { %1562 = vmatprep.subr.mxu1 %v593_v10  ;;  %1526 = vmatprep.subr.mxu0 %v560_v11  ;;  %v575_v20 = vld [vmem:[%s2475_s2 + $0x158] sm:$0xff]  ;;  %v590_v22 = vld [vmem:[%s2475_s2 + $0x1d0] sm:$0xff]  ;;  %v557_v23 = vld [vmem:[%s2475_s2 + $0xc8] sm:$0xff] }
  0x36   : > { %1563 = vmatpush3.msra.mxu1 %v577_v12  ;;  %1527 = vmatpush3.msra.mxu0 %v544_v13  ;;  %v574_v24 = vld [vmem:[%s2475_s2 + $0x150] sm:$0xff]  ;;  %v541_v25 = vld [vmem:[%s2475_s2 + $0x48] sm:$0xff]  ;;  %v556_v27 = vld [vmem:[%s2475_s2 + $0xc0] sm:$0xff] }
  0x37   : > { %1564 = vmatprep.subr.mxu1 %v592_v14  ;;  %1528 = vmatprep.subr.mxu0 %v559_v15  ;;  %v589_v26 = vld [vmem:[%s2475_s2 + $0x1c8] sm:$0xff]  ;;  %v540_v29 = vld [vmem:[%s2475_s2 + $0x40] sm:$0xff]  ;;  %v555_v31 = vld [vmem:[%s2475_s2 + $0xb8] sm:$0xff] }
  0x38   : > { %1565 = vmatpush3.msra.mxu1 %v576_v16  ;;  %1529 = vmatpush3.msra.mxu0 %v543_v17  ;;  %v573_v28 = vld [vmem:[%s2475_s2 + $0x148] sm:$0xff]  ;;  %v588_v30 = vld [vmem:[%s2475_s2 + $0x1c0] sm:$0xff]  ;;  %v539_v33 = vld [vmem:[%s2475_s2 + $0x38] sm:$0xff] }
  0x39   : > { %1566 = vmatprep.subr.mxu1 %v591_v18  ;;  %1530 = vmatprep.subr.mxu0 %v558_v19  ;;  %v572_v32 = vld [vmem:[%s2475_s2 + $0x140] sm:$0xff]  ;;  %v587_v34 = vld [vmem:[%s2475_s2 + $0x1b8] sm:$0xff]  ;;  %v554_v35 = vld [vmem:[%s2475_s2 + $0xb0] sm:$0xff] }
  0x3a   : > { %1567 = vmatpush3.msra.mxu1 %v575_v20  ;;  %1531 = vmatpush3.msra.mxu0 %v542_v21  ;;  %v571_v36 = vld [vmem:[%s2475_s2 + $0x138] sm:$0xff]  ;;  %v538_v37 = vld [vmem:[%s2475_s2 + $0x30] sm:$0xff]  ;;  %v553_v39 = vld [vmem:[%s2475_s2 + $0xa8] sm:$0xff] }
  0x3b   : > { %1568 = vmatprep.subr.mxu1 %v590_v22  ;;  %1532 = vmatprep.subr.mxu0 %v557_v23  ;;  %v586_v38 = vld [vmem:[%s2475_s2 + $0x1b0] sm:$0xff]  ;;  %v537_v41 = vld [vmem:[%s2475_s2 + $0x28] sm:$0xff]  ;;  %v552_v43 = vld [vmem:[%s2475_s2 + $0xa0] sm:$0xff] }
  0x3c   : > { %1569 = vmatpush3.msra.mxu1 %v574_v24  ;;  %1533 = vmatpush3.msra.mxu0 %v541_v25  ;;  %v570_v40 = vld [vmem:[%s2475_s2 + $0x130] sm:$0xff]  ;;  %v585_v42 = vld [vmem:[%s2475_s2 + $0x1a8] sm:$0xff]  ;;  %v536_v45 = vld [vmem:[%s2475_s2 + $0x20] sm:$0xff] }
  0x3d   : > { %1570 = vmatprep.subr.mxu1 %v589_v26  ;;  %1534 = vmatprep.subr.mxu0 %v556_v27  ;;  %v569_v44 = vld [vmem:[%s2475_s2 + $0x128] sm:$0xff]  ;;  %v584_v46 = vld [vmem:[%s2475_s2 + $0x1a0] sm:$0xff]  ;;  %v551_v47 = vld [vmem:[%s2475_s2 + $0x98] sm:$0xff] }
  0x3e   : > { %1571 = vmatpush3.msra.mxu1 %v573_v28  ;;  %1535 = vmatpush3.msra.mxu0 %v540_v29  ;;  %v568_v48 = vld [vmem:[%s2475_s2 + $0x120] sm:$0xff]  ;;  %v535_v49 = vld [vmem:[%s2475_s2 + $0x18] sm:$0xff]  ;;  %v550_v51 = vld [vmem:[%s2475_s2 + $0x90] sm:$0xff] }
  0x3f   : > { %1572 = vmatprep.subr.mxu1 %v588_v30  ;;  %1536 = vmatprep.subr.mxu0 %v555_v31  ;;  %v583_v50 = vld [vmem:[%s2475_s2 + $0x198] sm:$0xff]  ;;  %v534_v53 = vld [vmem:[%s2475_s2 + $0x10] sm:$0xff]  ;;  %v549_v55 = vld [vmem:[%s2475_s2 + $0x88] sm:$0xff] }
  0x40   : > { %1573 = vmatpush3.msra.mxu1 %v572_v32  ;;  %1537 = vmatpush3.msra.mxu0 %v539_v33  ;;  %v567_v52 = vld [vmem:[%s2475_s2 + $0x118] sm:$0xff]  ;;  %v582_v54 = vld [vmem:[%s2475_s2 + $0x190] sm:$0xff]  ;;  %v533_v57 = vld [vmem:[%s2475_s2 + $0x8] sm:$0xff] }
  0x41   : > { %1574 = vmatprep.subr.mxu1 %v587_v34  ;;  %1538 = vmatprep.subr.mxu0 %v554_v35  ;;  %v566_v56 = vld [vmem:[%s2475_s2 + $0x110] sm:$0xff]  ;;  %v581_v58 = vld [vmem:[%s2475_s2 + $0x188] sm:$0xff]  ;;  %v548_v59 = vld [vmem:[%s2475_s2 + $0x80] sm:$0xff] }
  0x42   : > { %1575 = vmatpush3.msra.mxu1 %v571_v36  ;;  %1539 = vmatpush3.msra.mxu0 %v538_v37  ;;  %v521_v60 = vld [vmem:[%s2173_s29 + $0x8] sm:$0xff]  ;;  %v532_v61 = vld [vmem:[%s2475_s2] sm:$0xff]  ;;  %v627_v1 = vld [vmem:[%s2475_s2 + $0x2f8] sm:$0xff] }
  0x43   : > { %1576 = vmatprep.subr.mxu1 %v586_v38  ;;  %1540 = vmatprep.subr.mxu0 %v553_v39  ;;  %v565_v62 = vld [vmem:[%s2475_s2 + $0x108] sm:$0xff]  ;;  %v520_v63 = vld [vmem:[%s2173_s29] sm:$0xff]  ;;  %v523_v3 = vld [vmem:[%s2173_s29 + $0x18] sm:$0xff] }
  0x44   : > { %1577 = vmatpush3.msra.mxu1 %v570_v40  ;;  %1541 = vmatpush3.msra.mxu0 %v537_v41  ;;  %v580_v0 = vld [vmem:[%s2475_s2 + $0x180] sm:$0xff]  ;;  %v611_v4 = vld [vmem:[%s2475_s2 + $0x278] sm:$0xff]  ;;  %v522_v5 = vld [vmem:[%s2173_s29 + $0x10] sm:$0xff] }
  0x45   : > { %1578 = vmatprep.subr.mxu1 %v585_v42  ;;  %1542 = vmatprep.subr.mxu0 %v552_v43  ;;  %v564_v2 = vld [vmem:[%s2475_s2 + $0x100] sm:$0xff]  ;;  %v626_v6 = vld [vmem:[%s2475_s2 + $0x2f0] sm:$0xff]  ;;  %v527_v8 = vld [vmem:[%s2173_s29 + $0x38] sm:$0xff] }
  0x46   : > { %1579 = vmatpush3.msra.mxu1 %v569_v44  ;;  %1543 = vmatpush3.msra.mxu0 %v536_v45  ;;  %v610_v7 = vld [vmem:[%s2475_s2 + $0x270] sm:$0xff]  ;;  %v625_v9 = vld [vmem:[%s2475_s2 + $0x2e8] sm:$0xff]  ;;  %v624_v13 = vld [vmem:[%s2475_s2 + $0x2e0] sm:$0xff] }
  0x47   : > { %1580 = vmatprep.subr.mxu1 %v584_v46  ;;  %1544 = vmatprep.subr.mxu0 %v551_v47  ;;  %v526_v10 = vld [vmem:[%s2173_s29 + $0x30] sm:$0xff]  ;;  %v609_v11 = vld [vmem:[%s2475_s2 + $0x268] sm:$0xff]  ;;  %v528_v14 = vld [vmem:[%s2173_s29 + $0x40] sm:$0xff] }
  0x48   : > { %1581 = vmatpush3.msra.mxu1 %v568_v48  ;;  %1545 = vmatpush3.msra.mxu0 %v535_v49  ;;  %v529_v12 = vld [vmem:[%s2173_s29 + $0x48] sm:$0xff]  ;;  %v608_v15 = vld [vmem:[%s2475_s2 + $0x260] sm:$0xff]  ;;  %v623_v17 = vld [vmem:[%s2475_s2 + $0x2d8] sm:$0xff] }
  0x49   : > { %1582 = vmatprep.subr.mxu1 %v583_v50  ;;  %1546 = vmatprep.subr.mxu0 %v550_v51  ;;  %v525_v16 = vld [vmem:[%s2173_s29 + $0x28] sm:$0xff]  ;;  %v607_v18 = vld [vmem:[%s2475_s2 + $0x258] sm:$0xff]  ;;  %v622_v19 = vld [vmem:[%s2475_s2 + $0x2d0] sm:$0xff] }
  0x4a   : > { %1583 = vmatpush3.msra.mxu1 %v567_v52  ;;  %1547 = vmatpush3.msra.mxu0 %v534_v53  ;;  %v606_v20 = vld [vmem:[%s2475_s2 + $0x250] sm:$0xff]  ;;  %v621_v21 = vld [vmem:[%s2475_s2 + $0x2c8] sm:$0xff]  ;;  %v620_v23 = vld [vmem:[%s2475_s2 + $0x2c0] sm:$0xff] }
  0x4b   : > { %1584 = vmatprep.subr.mxu1 %v582_v54  ;;  %1548 = vmatprep.subr.mxu0 %v549_v55  ;;  %v605_v22 = vld [vmem:[%s2475_s2 + $0x248] sm:$0xff]  ;;  %v604_v24 = vld [vmem:[%s2475_s2 + $0x240] sm:$0xff]  ;;  %v619_v25 = vld [vmem:[%s2475_s2 + $0x2b8] sm:$0xff] }
  0x4c   : > { %1585 = vmatpush3.msra.mxu1 %v566_v56  ;;  %1549 = vmatpush3.msra.mxu0 %v533_v57  ;;  %v603_v26 = vld [vmem:[%s2475_s2 + $0x238] sm:$0xff]  ;;  %v618_v27 = vld [vmem:[%s2475_s2 + $0x2b0] sm:$0xff]  ;;  %v617_v29 = vld [vmem:[%s2475_s2 + $0x2a8] sm:$0xff] }
  0x4d   : > { %1586 = vmatprep.subr.mxu1 %v581_v58  ;;  %1550 = vmatprep.subr.mxu0 %v548_v59  ;;  %v602_v28 = vld [vmem:[%s2475_s2 + $0x230] sm:$0xff]  ;;  %v601_v30 = vld [vmem:[%s2475_s2 + $0x228] sm:$0xff]  ;;  %v616_v31 = vld [vmem:[%s2475_s2 + $0x2a0] sm:$0xff] }
  0x4e   : > { %699 = vmatprep.mubr.f32.mxu0 %v521_v60  ;;  %1551 = vmatpush3.msra.mxu0 %v532_v61  ;;  %v600_v32 = vld [vmem:[%s2475_s2 + $0x220] sm:$0xff]  ;;  %v615_v33 = vld [vmem:[%s2475_s2 + $0x298] sm:$0xff]  ;;  %v614_v35 = vld [vmem:[%s2475_s2 + $0x290] sm:$0xff] }
  0x4f   : > { %1587 = vmatpush3.msra.mxu1 %v565_v62  ;;  %700 = vmatmul.mubr.f32.vlgmr.msra.gmra.mxu0 %v520_v63  ;;  %v599_v34 = vld [vmem:[%s2475_s2 + $0x218] sm:$0xff]  ;;  %v598_v36 = vld [vmem:[%s2475_s2 + $0x210] sm:$0xff]  ;;  %v613_v37 = vld [vmem:[%s2475_s2 + $0x288] sm:$0xff] }
  0x50   : > { %1588 = vmatprep.subr.mxu1 %v580_v0  ;;  %1596 = vmatprep.subr.mxu0 %v627_v1  ;;  %v597_v38 = vld [vmem:[%s2475_s2 + $0x208] sm:$0xff]  ;;  %v612_v39 = vld [vmem:[%s2475_s2 + $0x280] sm:$0xff]  ;;  %v531_v42 = vld [vmem:[%s2173_s29 + $0x58] sm:$0xff] }
  0x51   : > { %1589 = vmatpush3.msra.mxu1 %v564_v2  ;;  %774 = vmatprep.mubr.f32.mxu1 %v523_v3  ;;  %v596_v40 = vld [vmem:[%s2475_s2 + $0x200] sm:$0xff]  ;;  %v530_v43 = vld [vmem:[%s2173_s29 + $0x50] sm:$0xff]  ;;  %v865_v44 = vld [vmem:[%s2477_s4 + $0x18] sm:$0xff] }
  0x52   : > { %1597 = vmatpush3.msra.mxu0 %v611_v4  ;;  %775 = vmatmul.mubr.f32.vlgmr.msra.gmra.mxu1 %v522_v5  ;;  %v524_v41 = vld [vmem:[%s2173_s29 + $0x20] sm:$0xff]  ;;  %v864_v45 = vld [vmem:[%s2477_s4 + $0x10] sm:$0xff]  ;;  %v863_v46 = vld [vmem:[%s2477_s4 + $0x8] sm:$0xff]  ;;  %s518_s29 = scalar_lea.vmem %s2489_s16, %s1493_s0  ;;  %s2429_s0 = scalar_lea.hbm %s2488_s15, %s1519_s25 }
  0x53   : > { %1598 = vmatprep.subr.mxu0 %v626_v6  ;;  %704 = vmatprep.mubr.f32.mxu0 %v527_v8  ;;  %v862_v47 = vld [vmem:[%s2477_s4] sm:$0xff]  ;;  %v960_v48 = vld [vmem:[%s2479_s6 + $0x18] sm:$0xff] }
  0x54   : > { %1599 = vmatpush3.msra.mxu0 %v610_v7  ;;  %779 = vmatprep.mubr.f32.mxu1 %v529_v12  ;;  %v1494_v55 = vld [vmem:[%s2476_s3] ss:$0 sm:$0xff]  ;;  %v959_v12 = vld [vmem:[%s2479_s6 + $0x10] sm:$0xff] }
  0x55   : > { %1600 = vmatprep.subr.mxu0 %v625_v9  ;;  %705 = vmatmul.mubr.f32.gmra.mxu0 %v526_v10 }
  0x56   : > { %1601 = vmatpush3.msra.mxu0 %v609_v11  ;;  %780 = vmatmul.mubr.f32.gmra.mxu1 %v528_v14  ;;  %v957_v14 = vld [vmem:[%s2479_s6] sm:$0xff] }
  0x57   : > { %1602 = vmatprep.subr.mxu0 %v624_v13  ;;  %849 = vmatprep.mubr.f32.mxu0 %v525_v16  ;;  %v958_v13 = vld [vmem:[%s2479_s6 + $0x8] sm:$0xff] }
  0x58   : > { %1603 = vmatpush3.msra.mxu0 %v608_v15  ;;  %1658 = vmatprep.subr.mxu1 %v865_v44  ;;  %v1056_v15 = vld [vmem:[%s2481_s8 + $0x18] sm:$0xff] }
  0x59   : > { %1604 = vmatprep.subr.mxu0 %v623_v17  ;;  %1659 = vmatpush3.msra.mxu1 %v865_v44  ;;  %v1504_v44 = vld [vmem:[%s2484_s11] ss:$0 sm:$0xff] }
  0x5a   : > { %1605 = vmatpush3.msra.mxu0 %v607_v18  ;;  %1660 = vmatprep.subr.mxu1 %v864_v45  ;;  %v1055_v18 = vld [vmem:[%s2481_s8 + $0x10] sm:$0xff] }
  0x5b   : > { %1606 = vmatprep.subr.mxu0 %v622_v19  ;;  %1661 = vmatpush3.msra.mxu1 %v864_v45  ;;  %v1054_v19 = vld [vmem:[%s2481_s8 + $0x8] sm:$0xff]  ;;  %v1507_v45 = vld [vmem:[%s2485_s12] ss:$0 sm:$0xff] }
  0x5c   : > { %1607 = vmatpush3.msra.mxu0 %v606_v20  ;;  %1662 = vmatprep.subr.mxu1 %v863_v46  ;;  %v1053_v20 = vld [vmem:[%s2481_s8] sm:$0xff] }
  0x5d   : > { %1608 = vmatprep.subr.mxu0 %v621_v21  ;;  %1663 = vmatpush3.msra.mxu1 %v863_v46  ;;  %v1148_v21 = vld [vmem:[%s2483_s10 + $0x18] sm:$0xff] }
  0x5e   : > { %1609 = vmatpush3.msra.mxu0 %v605_v22  ;;  %1664 = vmatprep.subr.mxu1 %v862_v47  ;;  %v1495_v22 = vld [vmem:[%s2478_s5] ss:$0 sm:$0xff] }
  0x5f   : > { %1610 = vmatprep.subr.mxu0 %v620_v23  ;;  %1665 = vmatpush3.msra.mxu1 %v862_v47 }
  0x60   : > { %1611 = vmatpush3.msra.mxu0 %v604_v24  ;;  %1669 = vmatprep.subr.mxu1 %v960_v48 }
  0x61   : > { %1612 = vmatprep.subr.mxu0 %v619_v25 }
  0x62   : > { %1613 = vmatpush3.msra.mxu0 %v603_v26 }
  0x63   : > { %1614 = vmatprep.subr.mxu0 %v618_v27 }
  0x64   : > { %1615 = vmatpush3.msra.mxu0 %v602_v28 }
  0x65   : > { %1616 = vmatprep.subr.mxu0 %v617_v29  ;;  %v1147_v29 = vld [vmem:[%s2483_s10 + $0x10] sm:$0xff] }
  0x66   : > { %1617 = vmatpush3.msra.mxu0 %v601_v30  ;;  %v1146_v30 = vld [vmem:[%s2483_s10 + $0x8] sm:$0xff] }
  0x67   : > { %1618 = vmatprep.subr.mxu0 %v616_v31  ;;  %v1145_v31 = vld [vmem:[%s2483_s10] sm:$0xff] }
  0x68   : > { %1619 = vmatpush3.msra.mxu0 %v600_v32  ;;  %v1498_v32 = vld [vmem:[%s2480_s7] ss:$0 sm:$0xff] }
  0x69   : > { %1620 = vmatprep.subr.mxu0 %v615_v33 }
  0x6a   : > { %1621 = vmatpush3.msra.mxu0 %v599_v34 }
  0x6b   : > { %1622 = vmatprep.subr.mxu0 %v614_v35 }
  0x6c   : > { %1623 = vmatpush3.msra.mxu0 %v598_v36 }
  0x6d   : > { %1624 = vmatprep.subr.mxu0 %v613_v37 }
  0x6e   : > { %1625 = vmatpush3.msra.mxu0 %v597_v38 }
  0x6f   : > { %1626 = vmatprep.subr.mxu0 %v612_v39  ;;  %v1501_v39 = vld [vmem:[%s2510_s22] ss:$0 sm:$0xff]  ;;  %s1852_s22 = smov [#allocation4]  }
  0x70   : > { %1627 = vmatpush3.msra.mxu0 %v596_v40 }
  0x71   : > { %850 = vmatmul.mubr.f32.vlgmr.msra.gmra.mxu0 %v524_v41 }
  0x72   : > { %854 = vmatprep.mubr.f32.mxu0 %v531_v42 }
  0x75   : > { %855 = vmatmul.mubr.f32.gmra.mxu0 %v530_v43 }
 0x10f   : > { %v1552_v49 = vpop.f32.mrf.mxu0 }
 0x111   : > { %v1553_v50 = vpop.f32.mrf.mxu0 }
 0x112   : > { %v1590_v51 = vpop.f32.mrf.mxu1  ;;  %v1554_v54 = vadd.f32 %v1553_v50, %v1552_v49 }
 0x114   : > { %v1591_v53 = vpop.f32.mrf.mxu1  ;;  %v702_v58 = vadd.f32 %v1554_v54, %v1494_v55 }
 0x115   : > { %v1555_v52 = vpop.f32.mrf.mxu0  ;;  %v1592_v59 = vadd.f32 %v1591_v53, %v1590_v51  ;;  %v1508_v53 = vld [vmem:[%s2486_s13] ss:$0 sm:$0xff] }
 0x116   : > { %v1593_v57 = vpop.f32.mrf.mxu1 }
 0x117   : > { %v1556_v56 = vpop.f32.mrf.mxu0  ;;  %v777_v0 = vadd.f32 %v1592_v59, %v702_v58  ;;  %v1509_v58 = vld [vmem:[%s2487_s14] ss:$0 sm:$0xff] }
 0x118   : > { %v1557_v60 = vadd.f32 %v1556_v56, %v1555_v52  ;;  %v1594_v61 = vpop.f32.mrf.mxu1 }
 0x119   : > { %v1595_v2 = vadd.f32 %v1594_v61, %v1593_v57 }
 0x11a   : > { %v707_v1 = vadd.f32 %v1557_v60, %v1494_v55 }
 0x11c   : > { %v782_v7 = vadd.f32 %v1595_v2, %v707_v1 }
 0x131   : > { %v1628_v62 = vpop.f32.mrf.mxu0 }
 0x133   : > { %v1629_v63 = vpop.f32.mrf.mxu0 }
 0x134   : > { %v1630_v3 = vadd.f32 %v1629_v63, %v1628_v62 }
 0x135   : > { %v1631_v4 = vpop.f32.mrf.mxu0 }
 0x136   : > { %v852_v5 = vadd.f32 %v1630_v3, %v777_v0 }
 0x137   : > { %v1632_v6 = vpop.f32.mrf.mxu0 }
 0x138   : > { %v2328_v8 = vmax.f32 %v852_v5, 0.0  ;;  %v1633_v9 = vadd.f32 %v1632_v6, %v1631_v4 }
 0x13a   : > { %v857_v10 = vadd.f32 %v1633_v9, %v782_v7  ;;  %968 = vrot.lane.b32.xlu0 %v2328_v8, %s1851_s17  ;;  %1666 = vmatprep.mubr.msk.f32.mxu1 %vm873_vm0, %v2328_v8  ;;  %v1244_v49 = vmul.f32 %v1507_v45, %v2328_v8 }
 0x13c   : > { %v2333_v11 = vmax.f32 %v857_v10, 0.0  ;;  %v1247_v51 = vsel %vm1246_vm1, %v1244_v49, 0.0 }
 0x13e   : > { %970 = vrot.lane.b32.xlu0 %v2333_v11, %s1851_s17  ;;  %1667 = vmatmul.mubr.msk.f32.vlgmr.msra.gmra.mxu1 %vm873_vm0, %v2333_v11  ;;  %v1245_v52 = vmul.f32 %v1507_v45, %v2333_v11  ;;  %s1394_s17 = sshll.u32 %s498_s30, 4  ;;  %s2431_s17 = int_to_ptr.vmem [resolvable:$true] %s1394_s17 }
 0x13f   : > { %1670 = vmatpush3.msra.mxu1 %v960_v48  ;;  %s1786_s9 = scalar_lea.vmem %s2431_s17, 256 }
 0x140   : > { %1671 = vmatprep.subr.mxu1 %v959_v12  ;;  %v1250_v54 = vsel %vm1246_vm1, %v1245_v52, 0.0  ;;  %p1787_p2 = scmp.ne.s32.totalorder %s2431_s17, %s1786_s9 }
 0x141   : > { %1672 = vmatpush3.msra.mxu1 %v959_v12 }
 0x142   : > { %1673 = vmatprep.subr.mxu1 %v958_v13  ;;  %p1788_p3 = pnand %p1787_p2, %p1981_p10 }
 0x143   : > { %1674 = vmatpush3.msra.mxu1 %v958_v13 }
 0x144   : > { %1675 = vmatprep.subr.mxu1 %v957_v14  ;;  %p1789_p4 = pneg %p1788_p3 }
 0x145   : > { %1676 = vmatpush3.msra.mxu1 %v957_v14 }
 0x146   : > { %1680 = vmatprep.subr.mxu1 %v1056_v15 }
 0x1ac   : > { %v969_v16 = vpop.permute.xlu0 %968 }
 0x1ad   : > { %1677 = vmatprep.mubr.msk.f32.mxu1 %vm873_vm0, %v969_v16 }
 0x1b0   : > { %v971_v17 = vpop.permute.xlu0 %970 }
 0x1b1   : > { %1678 = vmatmul.mubr.msk.f32.vlgmr.msra.gmra.mxu1 %vm873_vm0, %v971_v17 }
 0x1b2   : > { %1681 = vmatpush3.msra.mxu1 %v1056_v15 }
 0x1b3   : > { %1682 = vmatprep.subr.mxu1 %v1055_v18 }
 0x1b4   : > { %1683 = vmatpush3.msra.mxu1 %v1055_v18 }
 0x1b5   : > { %1684 = vmatprep.subr.mxu1 %v1054_v19 }
 0x1b6   : > { %1685 = vmatpush3.msra.mxu1 %v1054_v19 }
 0x1b7   : > { %1686 = vmatprep.subr.mxu1 %v1053_v20 }
 0x1b8   : > { %1687 = vmatpush3.msra.mxu1 %v1053_v20 }
 0x1b9   : > { %1691 = vmatprep.subr.mxu1 %v1148_v21 }
 0x1fe   : > { %v1668_v23 = vpop.f32.mrf.mxu1 }
 0x1ff   : > { %v952_v24 = vadd.f32 %v1668_v23, %v1495_v22 }
 0x200   : > { %v946_v25 = vpop.f32.mrf.mxu1 }
 0x201   : > { %v947_v26 = vadd.f32 %v1495_v22, %v946_v25  ;;  %v956_v28 = vmax.f32 %v952_v24, 0.0 }
 0x203   : > { %v955_v27 = vmax.f32 %v947_v26, 0.0  ;;  %v1261_v57 = vmul.f32 %v1508_v53, %v956_v28 }
 0x205   : > { %1688 = vmatprep.mubr.msk.f32.mxu1 %vm873_vm0, %v955_v27  ;;  %v1260_v55 = vmul.f32 %v1508_v53, %v955_v27  ;;  %v1265_v59 = vsel %vm873_vm0, %v1261_v57, 0.0 }
 0x206   : > { %1689 = vmatmul.mubr.msk.f32.vlgmr.msra.gmra.mxu1 %vm873_vm0, %v956_v28 }
 0x207   : > { %1692 = vmatpush3.msra.mxu1 %v1148_v21  ;;  %v1262_v56 = vsel %vm873_vm0, %v1260_v55, 0.0  ;;  %v1288_v21 = vstv %s1510_s28 }
 0x208   : > { %1693 = vmatprep.subr.mxu1 %v1147_v29 }
 0x209   : > { %1694 = vmatpush3.msra.mxu1 %v1147_v29 }
 0x20a   : > { %1695 = vmatprep.subr.mxu1 %v1146_v30 }
 0x20b   : > { %1696 = vmatpush3.msra.mxu1 %v1146_v30 }
 0x20c   : > { %1697 = vmatprep.subr.mxu1 %v1145_v31 }
 0x20d   : > { %1698 = vmatpush3.msra.mxu1 %v1145_v31 }
 0x271   : > { %v1679_v33 = vpop.f32.mrf.mxu1 }
 0x272   : > { %v1048_v34 = vadd.f32 %v1679_v33, %v1498_v32 }
 0x273   : > { %v1042_v35 = vpop.f32.mrf.mxu1 }
 0x274   : > { %v1043_v36 = vadd.f32 %v1498_v32, %v1042_v35  ;;  %v1052_v38 = vmax.f32 %v1048_v34, 0.0 }
 0x276   : > { %v1051_v37 = vmax.f32 %v1043_v36, 0.0  ;;  %v1278_v62 = vmul.f32 %v1509_v58, %v1052_v38 }
 0x278   : > { %1699 = vmatprep.mubr.msk.f32.mxu1 %vm873_vm0, %v1051_v37  ;;  %v1277_v60 = vmul.f32 %v1509_v58, %v1051_v37  ;;  %v1282_v1 = vsel %vm873_vm0, %v1278_v62, 0.0 }
 0x279   : > { %1700 = vmatmul.mubr.msk.f32.vlgmr.msra.gmra.mxu1 %vm873_vm0, %v1052_v38 }
 0x27a   : > { %v1279_v61 = vsel %vm873_vm0, %v1277_v60, 0.0 }
 0x2c6   : > { %v1690_v40 = vpop.f32.mrf.mxu1 }
 0x2c7   : > { %v1142_v41 = vadd.f32 %v1690_v40, %v1501_v39 }
 0x2c8   : > { %v1136_v42 = vpop.f32.mrf.mxu1 }
 0x2c9   : > { %1317 = vmax.xlane.f32.xlu1 %v1142_v41  ;;  %v1137_v43 = vadd.f32 %v1501_v39, %v1136_v42 }
 0x2cd   : > { %1315 = vmax.xlane.f32.xlu1 %v1137_v43 }
 0x339   : > { %v1701_v46 = vpop.f32.mrf.mxu1 }
 0x33a   : > { %v1234_v47 = vadd.f32 %v1701_v46, %v1504_v44 }
 0x33b   : > { %v1228_v48 = vpop.f32.mrf.mxu1 }
 0x33c   : > { %v1229_v50 = vadd.f32 %v1504_v44, %v1228_v48  ;;  %1343 = vmax.xlane.f32.xlu1 %v1234_v47  ;;  %v1306_v44 = vstv %s1305_s19 }
 0x33e   : > { %1341 = vmax.xlane.f32.xlu0 %v1229_v50 }
 0x340   : > { %1248 = vadd.xlane.f32.xlu1 %v1247_v51 }
 0x344   : > { %1251 = vadd.xlane.f32.xlu1 %v1250_v54 }
 0x348   : > { %1263 = vadd.xlane.f32.xlu1 %v1262_v56 }
 0x34c   : > { %1266 = vadd.xlane.f32.xlu1 %v1265_v59 }
 0x350   : > { %1280 = vadd.xlane.f32.xlu1 %v1279_v61 }
 0x352   : > { %v1318_v63 = vpop.xlane.xlu1 %1317 }
 0x353   : > { %v1320_v0 = vsub.f32 %v1142_v41, %v1318_v63 }
 0x354   : > { %1283 = vadd.xlane.f32.xlu1 %v1282_v1 }
 0x355   : > { %v1323_v2 = vmul.f32 1.442695, %v1320_v0 }
 0x356   : > { %v1316_v3 = vpop.xlane.xlu1 %1315 }
 0x357   : > { %1746 = vpow2.f32 %v1323_v2  ;;  %v1319_v4 = vsub.f32 %v1137_v43, %v1316_v3 }
 0x359   : > { %v1321_v5 = vmul.f32 1.442695, %v1319_v4 }
 0x35b   : > { %1748 = vpow2.f32 %v1321_v5 }
 0x364   : > { %v2404_v6 = vpop.eup %1746 }
 0x365   : > { %1327 = vadd.xlane.f32.xlu0 %v2404_v6 }
 0x368   : > { %v2407_v7 = vpop.eup %1748 }
 0x369   : > { %1325 = vadd.xlane.f32.xlu1 %v2407_v7 }
 0x3c5   : > { %v1344_v8 = vpop.xlane.xlu1 %1343 }
 0x3c6   : > { %v1346_v9 = vsub.f32 %v1234_v47, %v1344_v8 }
 0x3c7   : > { %v1342_v10 = vpop.xlane.xlu0 %1341 }
 0x3c8   : > { %v1349_v11 = vmul.f32 1.442695, %v1346_v9  ;;  %v1345_v12 = vsub.f32 %v1229_v50, %v1342_v10  ;;  %v1310_v50 = vstv %s1513_s26 }
 0x3c9   : > { %v1249_v13 = vpop.xlane.xlu1 %1248 }
 0x3ca   : > { %1750 = vpow2.f32 %v1349_v11  ;;  %v1347_v14 = vmul.f32 1.442695, %v1345_v12 }
 0x3cc   : > { %1752 = vpow2.f32 %v1347_v14 }
 0x3cd   : > { %v1252_v15 = vpop.xlane.xlu1 %1251 }
 0x3d1   : > { %v1264_v16 = vpop.xlane.xlu1 %1263 }
 0x3d2   : > { %v1268_v19 = vadd.f32 %v1264_v16, %v1249_v13 }
 0x3d5   : > { %v1267_v17 = vpop.xlane.xlu1 %1266 }
 0x3d6   : > { %v1269_v24 = vadd.f32 %v1267_v17, %v1252_v15 }
 0x3d7   : > { %v2410_v18 = vpop.eup %1750 }
 0x3d8   : > { %1353 = vadd.xlane.f32.xlu0 %v2410_v18 }
 0x3d9   : > { %v2414_v20 = vpop.eup %1752  ;;  %v1281_v22 = vpop.xlane.xlu1 %1280 }
 0x3da   : > { %v1285_v23 = vadd.f32 %v1281_v22, %v1268_v19  ;;  %1351 = vadd.xlane.f32.xlu1 %v2414_v20 }
 0x3dc   : > { %v1289_v25 = vadd.f32 %v1288_v21, %v1285_v23 }
 0x3dd   : > { %v1284_v26 = vpop.xlane.xlu1 %1283 }
 0x3de   : > { %1291 = vst [vmem:[%s518_s29] sm:$0xff] %v1289_v25  ;;  %v1286_v27 = vadd.f32 %v1284_v26, %v1269_v24  ;;  %v1511_v30 = vmul.f32 -1.442695, %v1289_v25 }
 0x3e0   : > { %v1290_v28 = vadd.f32 %v1288_v21, %v1286_v27 }
 0x3e2   : > { %1292 = vst [vmem:[%s518_s29 + $0x8] sm:$0xff] %v1290_v28  ;;  %v1512_v29 = vmul.f32 -1.442695, %v1290_v28  ;;  %s1790_s29 = sshll.u32 %s1852_s22, 4  ;;  %s1791_s29 = int_to_ptr.vmem [resolvable:$false] %s1790_s29 }
 0x3e3   : > { %s1792_s19 = scalar_lea.vmem %s1791_s29, 512  ;;  %p1793_p5 = scmp.lt.s32.totalorder %s2431_s17, %s1791_s29 }
 0x3e4   : > { %1754 = vpow2.f32 %v1512_v29  ;;  %p1794_p6 = scmp.lt.s32.totalorder %s1792_s19, %s1786_s9 }
 0x3e5   : > { %1756 = vpow2.f32 %v1511_v30 }
 0x3e6   : > { %p1795_p7 = por %p1794_p6, %p1793_p5 }
 0x3e8   : > { %p1796_p8 = pnand %p1795_p7, %p1789_p4 }
 0x3ee   : > { %v1328_v32 = vpop.xlane.xlu0 %1327 }
 0x3ef   : > { %1758 = vrcp.f32 %v1328_v32 }
 0x3f1   : > { %v1755_v31 = vpop.eup %1754 }
 0x3f2   : > { %v1326_v33 = vpop.xlane.xlu1 %1325  ;;  %v1300_v34 = vadd.f32 1.0, %v1755_v31  ;;  %v1757_v35 = vpop.eup %1756 }
 0x3f3   : > { %1760 = vrcp.f32 %v1326_v33  ;;  %v1299_v36 = vadd.f32 1.0, %v1757_v35 }
 0x3f4   : > { %1762 = vrcp.f32 %v1300_v34 }
 0x3f5   : > { %1764 = vrcp.f32 %v1299_v36 }
 0x3fc   : > { %v1759_v39 = vpop.eup %1758 }
 0x3fd   : > { %v1332_v42 = vmul.f32 %v1759_v39, %v1328_v32 }
 0x3ff   : > { %v1334_v47 = vsub.f32 2.0, %v1332_v42 }
 0x400   : > { %v1761_v40 = vpop.eup %1760 }
 0x401   : > { %v1763_v41 = vpop.eup %1762  ;;  %v1331_v43 = vmul.f32 %v1761_v40, %v1326_v33  ;;  %v1336_v55 = vmul.f32 %v1759_v39, %v1334_v47 }
 0x402   : > { %v1308_v45 = vmul.f32 %v1763_v41, %v1306_v44  ;;  %v1765_v46 = vpop.eup %1764 }
 0x403   : > { %v1333_v48 = vsub.f32 2.0, %v1331_v43  ;;  %v1307_v52 = vmul.f32 %v1765_v46, %v1306_v44  ;;  %v1338_v63 = vmul.f32 %v2404_v6, %v1336_v55 }
 0x404   : > { %v1312_v51 = vadd.f32 %v1310_v50, %v1308_v45 }
 0x405   : > { %v1335_v56 = vmul.f32 %v1761_v40, %v1333_v48  ;;  %v1311_v60 = vadd.f32 %v1310_v50, %v1307_v52 }
 0x406   : > { %v1314_v59 = vsub.f32 1.0, %v1312_v51 }
 0x407   : > { %v1337_v0 = vmul.f32 %v2407_v7, %v1335_v56  ;;  %v1313_v4 = vsub.f32 1.0, %v1311_v60 }
 0x408   : > { %v1340_v3 = vmul.f32 %v1338_v63, %v1314_v59 }
 0x409   : > { %v1339_v9 = vmul.f32 %v1337_v0, %v1313_v4 }
 0x461   : > { %v1354_v37 = vpop.xlane.xlu0 %1353 }
 0x462   : > { %1766 = vrcp.f32 %v1354_v37 }
 0x463   : > { %v1352_v38 = vpop.xlane.xlu1 %1351 }
 0x464   : > { %1768 = vrcp.f32 %v1352_v38 }
 0x46f   : > { %v1767_v49 = vpop.eup %1766 }
 0x470   : > { %v1358_v53 = vmul.f32 %v1767_v49, %v1354_v37 }
 0x471   : > { %v1769_v54 = vpop.eup %1768 }
 0x472   : > { %v1360_v57 = vsub.f32 2.0, %v1358_v53  ;;  %v1357_v58 = vmul.f32 %v1769_v54, %v1352_v38 }
 0x474   : > { %v1362_v61 = vmul.f32 %v1767_v49, %v1360_v57  ;;  %v1359_v62 = vsub.f32 2.0, %v1357_v58 }
 0x476   : > { %v1364_v1 = vmul.f32 %v2410_v18, %v1362_v61  ;;  %v1361_v2 = vmul.f32 %v1769_v54, %v1359_v62 }
 0x478   : > { %v1366_v5 = vmul.f32 %v1364_v1, %v1312_v51  ;;  %v1363_v8 = vmul.f32 %v2414_v20, %v1361_v2 }
 0x47a   : > { %v1368_v10 = vadd.f32 %v1366_v5, %v1340_v3  ;;  %v1365_v11 = vmul.f32 %v1363_v8, %v1311_v60 }
 0x47c   : > { %1770 = vlog2.f32 %v1368_v10  ;;  %v1367_v12 = vadd.f32 %v1365_v11, %v1339_v9 }
 0x47e   : > { %1772 = vlog2.f32 %v1367_v12 }
 0x489   : > { %v1771_v6 = vpop.eup %1770 }
 0x48a   : > { %v1372_v7 = vmul.f32 0.6931472, %v1771_v6 }
 0x48b   : > { %v1773_v13 = vpop.eup %1772 }
 0x48c   : > { %v1370_v14 = vmul.f32 0.6931472, %v1773_v13  ;;  %1374 = vst [vmem:[%s498_s30 + $0x8] sm:$0xff] %v1372_v7 }
 0x48e   : > { %1373 = vst [vmem:[%s498_s30] sm:$0xff] %v1370_v14 }
 0x48f   : > { %1799 = shalt.err (!%p1796_p8)
}
 0x490   : > { %s1800_s26 = scalar_lea.hbm %s2429_s0, 256  ;;  %s1804_s25 = scalar_lea.hbm %s2488_s15, 512 }
 0x491   : > { %p1801_p9 = scmp.ne.s32.totalorder %s2429_s0, %s1800_s26  ;;  %p1805_p0 = scmp.lt.s32.totalorder %s2429_s0, %s2488_s15 }
 0x492   : > { %p1806_p1 = scmp.lt.s32.totalorder %s1804_s25, %s1800_s26 }
 0x493   : > { %p1802_p12 = pnand %p1801_p9, %p1981_p10 }
 0x494   : > { %p1807_p2 = por %p1806_p1, %p1805_p0 }
 0x495   : > { %p1803_p13 = pneg %p1802_p12 }
 0x497   : > { %p1808_p3 = pnand %p1807_p2, %p1803_p13 }
 0x499   : > { %1811 = shalt.err (!%p1808_p3)
}
 0x49a   : > { %s1853_s28 = smov 128   ;;  %s1854_s9 = smov 8  }
 0x49b   : > { %1703 = dma.vmem_to_hbm [thread:$0]  (%p1981_p10), %s2431_s17, 256, %s2429_s0, %s2433_s18, %s1853_s28, %s1853_s28, %s1854_s9  }
 0x49c PF: > { %s2511_s22 = sld [smem:[#allocation10_spill]] }
 0x49d   : > { %s2512_s29 = sld [smem:[#allocation8_spill]] }
 0x4a2   : > { %p1709_p4 = scmp.ge.s32.totalorder %s2511_s22, 2 }
 0x4a3   : > { %s1413_s23 = sand.u32 1, %s2512_s29  }
 0x4a4   : > { %p1706_p5 = pnand %p1709_p4, %p1985_p11  ;;  %s1414_s26 = scalar_lea.sflag [#allocation5], %s1413_s23 }
 0x4a6   : > { %p1707_p6 = pneg %p1706_p5 }
 0x4a8   : > { %1831 = dma.done.wait (%p1707_p6), %s1414_s26, 256  }
 0x4a9   : > { %1833 = vsyncadd (%p1707_p6), %s1414_s26, 4294967040  ;;  %s2514_s29 = sld [smem:[#allocation11_spill]]  ;;  %s2517_s26 = smov %s1840_s27 }
 0x4aa   : > { %s2515_s24 = sld [smem:[#allocation9_spill]] }
 0x4ab   : > { %s2516_s28 = sld [smem:[#allocation12_spill]] }
 0x4af   : > { %p33_p7 = scmp.ge.s32.totalorder %s2514_s29, 4  }
 0x4b0   : > { %s2518_s27 = smov %s2515_s24 }
 0x4b1   :  { %35 = sbr.rel (!%p33_p7) target bundleno = 26 (0x1a), region = 123 }
 0x4b6   :  { %1427 = vsyncpa [#allocation5], 1 }
 0x4b7   :  { %1429 = vsyncpa [#allocation5 + $0x1], 1 }

</bundles_post_ra>
